<compile_context>
chip_gen: v7x
topology: tpu7x:2x2x1
jax: 0.10.0
libtpu: 0.0.40
codegen_flags: <defaults>
</compile_context>

<pallas_src>
import functools

import jax
import jax.numpy as jnp
from jax.experimental import pallas as pl
from jax.experimental.pallas import tpu as pltpu


def _critic_kernel(s_ref, a_ref, w1s_ref, w1a_ref, b1_ref,
                   w2_ref, b2_ref, w3_ref, b3_ref, out_ref, *, action_fma):
    """One batch tile. Activations are (hidden, TB): batch on lanes."""
    # fc1, state part: (H, S) @ (S, TB) on the MXU, f32 accumulation.
    h1 = jnp.dot(w1s_ref[...], s_ref[...], preferred_element_type=jnp.float32)

    # fc1, action part (the t.cat([state, action], 1) is fused here).
    a = a_ref[...].astype(jnp.float32)          # (A, TB); no-op for f32 inputs
    if action_fma:
        # action_dim == 1: lane-broadcast VPU FMA instead of a K=1 MXU pass.
        h1 = h1 + w1a_ref[...] * a               # (H,1) * (1,TB) -> (H,TB)
    else:
        h1 = h1 + jnp.dot(w1a_ref[...], a, preferred_element_type=jnp.float32)
    h1 = jnp.maximum(h1 + b1_ref[...], 0.0)      # bias + ReLU, f32 on the VPU

    # fc2: (16, 16) f32 @ (16, TB) f32 -> (16, TB).  Weights stay f32 (tiny),
    # so no per-tile activation casts are needed.
    h2 = jnp.dot(w2_ref[...], h1, preferred_element_type=jnp.float32)
    h2 = jnp.maximum(h2 + b2_ref[...], 0.0)

    # fc3 (16 -> 1): VPU multiply + sublane (XLU) reduce, no M=1 MXU matmul.
    q = jnp.sum(h2 * w3_ref[...], axis=0, keepdims=True)
    out_ref[...] = (q + b3_ref[...]).astype(out_ref.dtype)   # (1, TB) lane-dense


def _choose_batch_tile(B, batch_tile):
    """Lane-dense batch tile: multiple of 128, or the full (small) batch."""
    if B < 512:
        return B                                  # single full-extent block
    # >= 2 grid steps so the "parallel" axis can shard across both v7x
    # TensorCores; capped by batch_tile (VMEM budget: ~3 * TB * 4 B * 8
    # sublane-padded rows, double-buffered -> ~1.5 MiB at TB=8192).
    tb = min(batch_tile, -(-B // 2))
    return max(128, ((tb + 127) // 128) * 128)


def critic_forward_t(state_t, action_t, params, *, batch_tile=8192):
    """Core entry point: state_t is (S, B), action_t is (A, B). Returns (B, 1) f32."""
    w1s, w1a, b1, w2, b2, w3, b3 = params
    S, B = state_t.shape
    A = action_t.shape[0]
    H = w2.shape[0]

    # fc1's state matmul runs in the weight dtype (f32 or bf16); producer-side cast.
    if state_t.dtype != w1s.dtype:
        state_t = state_t.astype(w1s.dtype)

    TB = _choose_batch_tile(B, batch_tile)
    grid = (pl.cdiv(B, TB),)

    const = lambda shape: pl.BlockSpec(shape, lambda i: tuple(0 for _ in shape))

    out_t = pl.pallas_call(
        functools.partial(_critic_kernel, action_fma=(A == 1)),
        out_shape=jax.ShapeDtypeStruct((1, B), jnp.float32),
        grid=grid,
        in_specs=[
            pl.BlockSpec((S, TB), lambda i: (0, i)),   # state tile (lane-dense)
            pl.BlockSpec((A, TB), lambda i: (0, i)),   # action tile (lane-dense)
            const((H, S)), const((H, A)), const((H, 1)),   # fc1 (split) + bias
            const((H, H)), const((H, 1)),                  # fc2 + bias
            const((H, 1)), const((1, 1)),                  # fc3 column + bias
        ],
        out_specs=pl.BlockSpec((1, TB), lambda i: (0, i)),
        compiler_params=pltpu.CompilerParams(dimension_semantics=("parallel",)),
    )(state_t, action_t, w1s, w1a, b1, w2, b2, w3, b3)

    # (1, B) -> (B, 1): data-order preserving reshape.
    return out_t.reshape(B, 1)


def critic_forward(state, action, params, *, batch_tile=8192):
    """PyTorch-compatible entry point: state (B, S), action (B, A) -> (B, 1).

    Transposes in the wrapper; in a real pipeline the producer should emit the
    transposed (feature, batch) layout directly and call `critic_forward_t`.
    """
    return critic_forward_t(state.T, action.T, params, batch_tile=batch_tile)


def init_critic_params(key, state_dim, action_dim, input_dtype=jnp.float32):
    """PyTorch-style init, laid out for the kernel.

    fc1 is split into a state part (H, S) stored in `input_dtype` (bf16
    recommended on v6e/v7x: the state input dominates HBM traffic) and an
    action part (H, A) kept f32 (used as a VPU FMA when action_dim == 1).
    fc2/fc3 weights and all biases stay f32; fc3 is stored as a (H, 1) column.
    """
    def linear(k, fan_in, fan_out):
        kw, kb = jax.random.split(k)
        bound = 1.0 / (fan_in ** 0.5)
        w = jax.random.uniform(kw, (fan_out, fan_in), jnp.float32, -bound, bound)
        b = jax.random.uniform(kb, (fan_out, 1), jnp.float32, -bound, bound)
        return w, b

    k1, k2, k3 = jax.random.split(key, 3)
    w1, b1 = linear(k1, state_dim + action_dim, 16)
    w2, b2 = linear(k2, 16, 16)
    w3, b3 = linear(k3, 16, 1)

    w1s = w1[:, :state_dim].astype(input_dtype)   # fc1 state part (matmul dtype)
    w1a = w1[:, state_dim:]                       # fc1 action part, f32
    return (w1s, w1a, b1, w2, b2, w3.T, b3)       # w3 as (16, 1) column


def _reference(state, action, params):
    """Pure-JAX reference with PyTorch semantics (x @ W.T + b)."""
    w1s, w1a, b1, w2, b2, w3, b3 = params
    w1 = jnp.concatenate([w1s.astype(jnp.float32), w1a], axis=1)
    sa = jnp.concatenate([state, action], axis=1).astype(jnp.float32)
    h = jnp.maximum(sa @ w1.T + b1.T, 0.0)
    h = jnp.maximum(h @ w2.T + b2.T, 0.0)
    return h @ w3 + b3.T


if __name__ == "__main__":
    state_dim, action_dim, batch = 4, 1, 2

    key = jax.random.PRNGKey(0)
    key, ks, ka = jax.random.split(key, 3)
    state = jax.random.normal(ks, (batch, state_dim), jnp.float32)
    action = jax.random.normal(ka, (batch, action_dim), jnp.float32)

    # fp32 end-to-end: strict check.
    params = init_critic_params(key, state_dim, action_dim)
    q = jax.block_until_ready(critic_forward(state, action, params))
    ref = _reference(state, action, params)
    assert q.shape == (batch, 1)
    assert jnp.allclose(q, ref, atol=1e-4, rtol=1e-4)

    # bf16 state input / fc1-state weight (v6e/v7x HBM-traffic lever): loose check.
    params_bf16 = init_critic_params(key, state_dim, action_dim,
                                     input_dtype=jnp.bfloat16)
    q_bf16 = jax.block_until_ready(critic_forward(state, action, params_bf16))
    assert jnp.allclose(q_bf16, ref, atol=5e-2, rtol=5e-2)

    # Exercise the batch-tiled grid: >= 2 grid steps + a partial last block,
    # both with the default tile and with a small explicit tile.
    key, ks2, ka2 = jax.random.split(key, 3)
    big_state = jax.random.normal(ks2, (1000, state_dim), jnp.float32)
    big_action = jax.random.normal(ka2, (1000, action_dim), jnp.float32)
    ref_big = _reference(big_state, big_action, params)

    q_big = jax.block_until_ready(critic_forward(big_state, big_action, params))
    assert q_big.shape == (1000, 1)
    assert jnp.allclose(q_big, ref_big, atol=1e-4, rtol=1e-4)

    q_big_small_tile = jax.block_until_ready(
        critic_forward(big_state, big_action, params, batch_tile=128))
    assert jnp.allclose(q_big_small_tile, ref_big, atol=1e-4, rtol=1e-4)

    # Preferred producer-side layout: already-transposed (feature, batch) inputs.
    q_t = jax.block_until_ready(
        critic_forward_t(big_state.T, big_action.T, params))
    assert jnp.allclose(q_t, ref_big, atol=1e-4, rtol=1e-4)

    print("KERNEL_OK")
</pallas_src>

<mosaic_0001>
module attributes {stable_mosaic.version = 11 : i64} {
  func.func @_critic_kernel(%arg0: i32, %arg1: memref<4x2xf32, #tpu.memory_space<vmem>>, %arg2: memref<1x2xf32, #tpu.memory_space<vmem>>, %arg3: memref<16x4xf32, #tpu.memory_space<vmem>>, %arg4: memref<16x1xf32, #tpu.memory_space<vmem>>, %arg5: memref<16x1xf32, #tpu.memory_space<vmem>>, %arg6: memref<16x16xf32, #tpu.memory_space<vmem>>, %arg7: memref<16x1xf32, #tpu.memory_space<vmem>>, %arg8: memref<16x1xf32, #tpu.memory_space<vmem>>, %arg9: memref<1x1xf32, #tpu.memory_space<vmem>>, %arg10: memref<1x2xf32, #tpu.memory_space<vmem>>) attributes {dimension_semantics = [#tpu.dimension_semantics<parallel>], iteration_bounds = array<i64: 1>, scalar_prefetch = 0 : i64, scratch_operands = 0 : i64, tpu.core_type = #tpu.core_type<tc>, window_params = [{transform_indices = @transform_0, window_bounds = array<i64: 4, 2>}, {transform_indices = @transform_1, window_bounds = array<i64: 1, 2>}, {pipeline_mode = #tpu.pipeline_mode<synchronous>, transform_indices = @transform_2, window_bounds = array<i64: 16, 4>}, {pipeline_mode = #tpu.pipeline_mode<synchronous>, transform_indices = @transform_3, window_bounds = array<i64: 16, 1>}, {pipeline_mode = #tpu.pipeline_mode<synchronous>, transform_indices = @transform_4, window_bounds = array<i64: 16, 1>}, {pipeline_mode = #tpu.pipeline_mode<synchronous>, transform_indices = @transform_5, window_bounds = array<i64: 16, 16>}, {pipeline_mode = #tpu.pipeline_mode<synchronous>, transform_indices = @transform_6, window_bounds = array<i64: 16, 1>}, {pipeline_mode = #tpu.pipeline_mode<synchronous>, transform_indices = @transform_7, window_bounds = array<i64: 16, 1>}, {pipeline_mode = #tpu.pipeline_mode<synchronous>, transform_indices = @transform_8, window_bounds = array<i64: 1, 1>}, {transform_indices = @transform_9, window_bounds = array<i64: 1, 2>}]} {
    %c0 = arith.constant 0 : index
    %c0_0 = arith.constant 0 : index
    %0 = vector.load %arg3[%c0, %c0_0] : memref<16x4xf32, #tpu.memory_space<vmem>>, vector<16x4xf32>
    %c0_1 = arith.constant 0 : index
    %c0_2 = arith.constant 0 : index
    %1 = vector.load %arg1[%c0_1, %c0_2] : memref<4x2xf32, #tpu.memory_space<vmem>>, vector<4x2xf32>
    %cst = arith.constant dense<0.000000e+00> : vector<16x2xf32>
    %2 = tpu.matmul %0, %1, %cst {dimension_numbers = #tpu.dot_dimension_numbers<[1], [0], [0], [1], [0, 0, 1, 1], [], []>} : vector<16x4xf32>, vector<4x2xf32>, vector<16x2xf32> -> vector<16x2xf32>
    %c0_3 = arith.constant 0 : index
    %c0_4 = arith.constant 0 : index
    %3 = vector.load %arg2[%c0_3, %c0_4] : memref<1x2xf32, #tpu.memory_space<vmem>>, vector<1x2xf32>
    %c0_5 = arith.constant 0 : index
    %c0_6 = arith.constant 0 : index
    %4 = vector.load %arg4[%c0_5, %c0_6] : memref<16x1xf32, #tpu.memory_space<vmem>>, vector<16x1xf32>
    %5 = vector.broadcast %4 : vector<16x1xf32> to vector<16x2xf32>
    %6 = vector.broadcast %3 : vector<1x2xf32> to vector<16x2xf32>
    %7 = arith.mulf %5, %6 : vector<16x2xf32>
    %8 = arith.addf %2, %7 : vector<16x2xf32>
    %c0_7 = arith.constant 0 : index
    %c0_8 = arith.constant 0 : index
    %9 = vector.load %arg5[%c0_7, %c0_8] : memref<16x1xf32, #tpu.memory_space<vmem>>, vector<16x1xf32>
    %10 = vector.broadcast %9 : vector<16x1xf32> to vector<16x2xf32>
    %11 = arith.addf %8, %10 : vector<16x2xf32>
    %cst_9 = arith.constant 0.000000e+00 : f32
    %12 = vector.broadcast %cst_9 : f32 to vector<16x2xf32>
    %13 = arith.maximumf %11, %12 : vector<16x2xf32>
    %c0_10 = arith.constant 0 : index
    %c0_11 = arith.constant 0 : index
    %14 = vector.load %arg6[%c0_10, %c0_11] : memref<16x16xf32, #tpu.memory_space<vmem>>, vector<16x16xf32>
    %cst_12 = arith.constant dense<0.000000e+00> : vector<16x2xf32>
    %15 = tpu.matmul %14, %13, %cst_12 {dimension_numbers = #tpu.dot_dimension_numbers<[1], [0], [0], [1], [0, 0, 1, 1], [], []>} : vector<16x16xf32>, vector<16x2xf32>, vector<16x2xf32> -> vector<16x2xf32>
    %c0_13 = arith.constant 0 : index
    %c0_14 = arith.constant 0 : index
    %16 = vector.load %arg7[%c0_13, %c0_14] : memref<16x1xf32, #tpu.memory_space<vmem>>, vector<16x1xf32>
    %17 = vector.broadcast %16 : vector<16x1xf32> to vector<16x2xf32>
    %18 = arith.addf %15, %17 : vector<16x2xf32>
    %cst_15 = arith.constant 0.000000e+00 : f32
    %19 = vector.broadcast %cst_15 : f32 to vector<16x2xf32>
    %20 = arith.maximumf %18, %19 : vector<16x2xf32>
    %c0_16 = arith.constant 0 : index
    %c0_17 = arith.constant 0 : index
    %21 = vector.load %arg8[%c0_16, %c0_17] : memref<16x1xf32, #tpu.memory_space<vmem>>, vector<16x1xf32>
    %22 = vector.broadcast %21 : vector<16x1xf32> to vector<16x2xf32>
    %23 = arith.mulf %20, %22 : vector<16x2xf32>
    %cst_18 = arith.constant dense<0.000000e+00> : vector<2xf32>
    %24 = vector.multi_reduction <add>, %23, %cst_18 [0] : vector<16x2xf32> to vector<2xf32>
    %25 = vector.shape_cast %24 : vector<2xf32> to vector<1x2xf32>
    %c0_19 = arith.constant 0 : index
    %c0_20 = arith.constant 0 : index
    %26 = vector.load %arg9[%c0_19, %c0_20] : memref<1x1xf32, #tpu.memory_space<vmem>>, vector<1x1xf32>
    %27 = vector.broadcast %26 : vector<1x1xf32> to vector<1x2xf32>
    %28 = arith.addf %25, %27 : vector<1x2xf32>
    %c0_21 = arith.constant 0 : index
    %c0_22 = arith.constant 0 : index
    %29 = vector.load %arg10[%c0_21, %c0_22] : memref<1x2xf32, #tpu.memory_space<vmem>>, vector<1x2xf32>
    tpu.vector_store %arg10[%c0_21, %c0_22], %28 {strides = array<i32>} : memref<1x2xf32, #tpu.memory_space<vmem>>, vector<1x2xf32>,
    return
  }
  func.func @transform_0(%arg0: i32) -> (i32, i32) {
    %c0_i32 = arith.constant 0 : i32
    %c0_i32_0 = arith.constant 0 : i32
    return %c0_i32, %arg0 : i32, i32
  }
  func.func @transform_1(%arg0: i32) -> (i32, i32) {
    %c0_i32 = arith.constant 0 : i32
    %c0_i32_0 = arith.constant 0 : i32
    return %c0_i32, %arg0 : i32, i32
  }
  func.func @transform_2(%arg0: i32) -> (i32, i32) {
    %c0_i32 = arith.constant 0 : i32
    %c0_i32_0 = arith.constant 0 : i32
    %c0_i32_1 = arith.constant 0 : i32
    return %c0_i32, %c0_i32_0 : i32, i32
  }
  func.func @transform_3(%arg0: i32) -> (i32, i32) {
    %c0_i32 = arith.constant 0 : i32
    %c0_i32_0 = arith.constant 0 : i32
    %c0_i32_1 = arith.constant 0 : i32
    return %c0_i32, %c0_i32_0 : i32, i32
  }
  func.func @transform_4(%arg0: i32) -> (i32, i32) {
    %c0_i32 = arith.constant 0 : i32
    %c0_i32_0 = arith.constant 0 : i32
    %c0_i32_1 = arith.constant 0 : i32
    return %c0_i32, %c0_i32_0 : i32, i32
  }
  func.func @transform_5(%arg0: i32) -> (i32, i32) {
    %c0_i32 = arith.constant 0 : i32
    %c0_i32_0 = arith.constant 0 : i32
    %c0_i32_1 = arith.constant 0 : i32
    return %c0_i32, %c0_i32_0 : i32, i32
  }
  func.func @transform_6(%arg0: i32) -> (i32, i32) {
    %c0_i32 = arith.constant 0 : i32
    %c0_i32_0 = arith.constant 0 : i32
    %c0_i32_1 = arith.constant 0 : i32
    return %c0_i32, %c0_i32_0 : i32, i32
  }
  func.func @transform_7(%arg0: i32) -> (i32, i32) {
    %c0_i32 = arith.constant 0 : i32
    %c0_i32_0 = arith.constant 0 : i32
    %c0_i32_1 = arith.constant 0 : i32
    return %c0_i32, %c0_i32_0 : i32, i32
  }
  func.func @transform_8(%arg0: i32) -> (i32, i32) {
    %c0_i32 = arith.constant 0 : i32
    %c0_i32_0 = arith.constant 0 : i32
    %c0_i32_1 = arith.constant 0 : i32
    return %c0_i32, %c0_i32_0 : i32, i32
  }
  func.func @transform_9(%arg0: i32) -> (i32, i32) {
    %c0_i32 = arith.constant 0 : i32
    %c0_i32_0 = arith.constant 0 : i32
    return %c0_i32, %arg0 : i32, i32
  }
}

</mosaic_0001>

<bundles_post_ra>
// kernel: tpu_custom_call.1
= control target key start
LH: loop header
LB: loop body
LE: loop exit
PB: predicated region body
PF: predicated region fallthrough
CT: control target
= control target key end

     0   :  { %s478_s0 = inlined_call_operand.vmem [shape: f32[4,2], index: 0, kind: input, shape index: {}]   ;;  %s479_s1 = inlined_call_operand.vmem [shape: f32[1,2], index: 1, kind: input, shape index: {}]   ;;  %s480_s2 = inlined_call_operand.vmem [shape: f32[16,4], index: 2, kind: input, shape index: {}]   ;;  %s481_s3 = inlined_call_operand.vmem [shape: f32[16,1], index: 3, kind: input, shape index: {}]   ;;  %s482_s4 = inlined_call_operand.vmem [shape: f32[16,1], index: 4, kind: input, shape index: {}]   ;;  %s483_s5 = inlined_call_operand.vmem [shape: f32[16,16], index: 5, kind: input, shape index: {}]   ;;  %s484_s6 = inlined_call_operand.vmem [shape: f32[16,1], index: 6, kind: input, shape index: {}]   ;;  %s485_s7 = inlined_call_operand.vmem [shape: f32[16,1], index: 7, kind: input, shape index: {}]   ;;  %s486_s8 = inlined_call_operand.<no memory space> [shape: f32[1,1], index: 8, kind: input, shape index: {}]   ;;  %s487_s9 = inlined_call_operand.hbm [shape: f32[1,2], index: 9, kind: output, shape index: {}]  }
   0x1   :  { %v14_v0 = vstv %s486_s8 }
   0x2   :  { %15 = vst [vmem:[#allocation2] sm:$0x1] %v14_v0 }
   0x3   :  { %v37_v1 = vld [vmem:[%s478_s0] sm:$0xf]  ;;  %vm66_vm0 = vcmask 1043456   ;;  %vm59_vm1 = vcmask 31744   ;;  %v36_v3 = vld [vmem:[%s480_s2 + $0x8] sm:$0xff]  ;;  %v367_v5 = vmov 0  }
   0x4   :  { %v35_v2 = vld [vmem:[%s480_s2] sm:$0xff]  ;;  %323 = vmatprep.subr.msk.mxu0 %vm66_vm0, %v37_v1  ;;  %341 = vset.pattern.permute.xlu0 %v367_v5  ;;  %v40_v7 = vld [vmem:[%s481_s3 + $0x8] sm:$0xff] }
   0x5   :  { %325 = vmatprep.mubr.msk.f32.mxu0 %vm59_vm1, %v35_v2  ;;  %v39_v4 = vld [vmem:[%s481_s3] sm:$0xff]  ;;  %324 = vmatpush3.msk.msra.mxu0 %vm66_vm0, %v37_v1 }
   0x6   :  { %v145_v6 = vld [vmem:[%s482_s4] sm:$0xff]  ;;  %326 = vmatmul.mubr.msk.f32.vlgmr.msra.gmra.mrb[0].mxu0 %vm59_vm1, %v36_v3  ;;  %43 = vperm.xlu0 %341, %v39_v4  }
   0x7   :  { %342 = vset.pattern.permute.xlu1 %v367_v5 }
   0x8   :  { %16 = vsyncpa [#allocation4], 0  ;;  %149 = vperm.xlu1 %342, %v145_v6   ;;  %v146_v8 = vld [vmem:[%s482_s4 + $0x8] sm:$0xff]  ;;  %v163_v9 = vld [vmem:[%s484_s6] sm:$0xff]  ;;  %vm175_vm2 = vcmask 130048   ;;  %vm273_vm3 = vcmask 15360   ;;  %v289_v46 = vlaneseq }
   0x9   :  { %v164_v10 = vld [vmem:[%s484_s6 + $0x8] sm:$0xff]  ;;  %v259_v11 = vld [vmem:[%s485_s7] sm:$0xff]  ;;  %vm294_vm4 = vcmask 8192  }
   0xa   :  { %48 = vperm.xlu0 %341, %v40_v7   ;;  %v260_v12 = vld [vmem:[%s485_s7 + $0x8] sm:$0xff]  ;;  %v283_v13 = vld [vmem:[#allocation2] sm:$0x1]  ;;  %v290_v49 = vshrl.u32 %v289_v46, 7 }
   0xb   :  { %v161_v14 = vld [vmem:[%s483_s5] sm:$0xff]  ;;  %v162_v31 = vld [vmem:[%s483_s5 + $0x8] sm:$0xff] }
   0xc   :  { %154 = vperm.xlu1 %342, %v146_v8   ;;  %332 = vmatprep.mubr.msk.f32.mxu1 %vm175_vm2, %v161_v14  ;;  %v310_v16 = vld [vmem:[%s479_s1] ss:$0 sm:$0xff]  ;;  %v291_v52 = vsub.s32 0, %v290_v49  ;;  %s368_s1 = smov [#allocation3]  }
   0xd   :  { %s302_s5 = sshll.u32 %s368_s1, 4  ;;  %s303_s5 = int_to_ptr.vmem [resolvable:$true] %s302_s5 }
   0xe   :  { %167 = vperm.xlu0 %341, %v163_v9   ;;  %s343_s11 = scalar_lea.vmem %s303_s5, 16  ;;  %s347_s12 = scalar_lea.vmem %s303_s5, 32 }
   0xf   :  { %p344_p0 = scmp.ne.s32.totalorder %s303_s5, %s343_s11  ;;  %p348_p1 = scmp.lt.s32.totalorder %s303_s5, %s303_s5 }
  0x10   :  { %172 = vperm.xlu1 %342, %v164_v10   ;;  %p349_p2 = scmp.lt.s32.totalorder %s347_s12, %s343_s11 }
  0x12   :  { %263 = vperm.xlu0 %341, %v259_v11   ;;  %p350_p3 = por %p349_p2, %p348_p1 }
  0x14   :  { %268 = vperm.xlu1 %342, %v260_v12   ;;  %p351_p4 = pnand %p350_p3, %p344_p0 }
  0x16   :  { %286 = vperm.xlu0 %341, %v283_v13  }
  0x85   :  { %v44_v15 = vpop.permute.xlu0 %43 }
  0x86   :  { %v57_v20 = vmul.f32 %v310_v16, %v44_v15 }
  0x87   :  { %v150_v17 = vpop.permute.xlu1 %149 }
  0x89   :  { %v49_v18 = vpop.permute.xlu0 %48 }
  0x8a   :  { %v58_v19 = vmul.f32 %v310_v16, %v49_v18 }
  0x8b   :  { %v155_v24 = vpop.permute.xlu1 %154 }
  0x8d   :  { %v168_v33 = vpop.permute.xlu0 %167 }
  0x8f   :  { %v173_v32 = vpop.permute.xlu1 %172 }
  0x91   :  { %v264_v41 = vpop.permute.xlu0 %263 }
  0x93   :  { %v269_v39 = vpop.permute.xlu1 %268 }
  0x95   :  { %v287_v54 = vpop.permute.xlu0 %286 }
  0x96   :  { %v292_v56 = vrot.slane %v287_v54, %v291_v52 }
  0xd9   :  { %v327_v21 = vpop.f32.mrb[0].mxu0 }
  0xda   :  { %v142_v22 = vadd.f32 %v327_v21, %v58_v19  ;;  %v136_v23 = vpop.f32.mrb[1].mxu0 }
  0xdb   :  { %v137_v25 = vadd.f32 %v136_v23, %v57_v20 }
  0xdc   :  { %v158_v26 = vadd.f32 %v155_v24, %v142_v22 }
  0xdd   :  { %v157_v27 = vadd.f32 %v150_v17, %v137_v25 }
  0xde   :  { %v160_v28 = vmax.f32 %v158_v26, 0.0 }
  0xdf   :  { %v159_v29 = vmax.f32 %v157_v27, 0.0 }
  0xe1   :  { %v335_v30 = vpack.c.bf16 %v160_v28, %v159_v29 }
  0xe3   :  { %336 = vmatprep.subr.bf16.mxu1 %v335_v30 }
  0xe4   :  { %338 = vmatpush3.bf16.msra.mxu1 %v335_v30 }
  0xe7   :  { %333 = vmatmul.mubr.msk.f32.vlgmr.msra.gmra.mrb[0].mxu1 %vm175_vm2, %v162_v31 }
 0x1ba   :  { %v334_v34 = vpop.f32.mrb[0].mxu1 }
 0x1bb   :  { %v254_v35 = vadd.f32 %v334_v34, %v173_v32  ;;  %v248_v36 = vpop.f32.mrb[1].mxu1 }
 0x1bc   :  { %v249_v37 = vadd.f32 %v248_v36, %v168_v33 }
 0x1bd   :  { %v258_v38 = vmax.f32 %v254_v35, 0.0 }
 0x1be   :  { %v257_v40 = vmax.f32 %v249_v37, 0.0 }
 0x1bf   :  { %v272_v42 = vmul.f32 %v269_v39, %v258_v38 }
 0x1c0   :  { %v271_v43 = vmul.f32 %v264_v41, %v257_v40 }
 0x1c1   :  { %v275_v44 = vsel %vm273_vm3, %v272_v42, 0.0 }
 0x1c2   :  { %v274_v45 = vsel %vm273_vm3, %v271_v43, 0.0 }
 0x1c3   :  { %v276_v47 = vadd.f32 %v275_v44, %v274_v45 }
 0x1c5   :  { %v277_v48 = vrot.slane %v276_v47, 4 }
 0x1c7   :  { %v278_v50 = vadd.f32 %v277_v48, %v276_v47 }
 0x1c9   :  { %v279_v51 = vrot.slane %v278_v50, 2 }
 0x1cb   :  { %v280_v53 = vadd.f32 %v279_v51, %v278_v50 }
 0x1cd   :  { %v281_v55 = vrot.slane %v280_v53, 1 }
 0x1cf   :  { %v282_v57 = vadd.f32 %v281_v55, %v280_v53 }
 0x1d1   :  { %v293_v58 = vadd.f32 %v292_v56, %v282_v57 }
 0x1d3   :  { %295 = vst.msk [vmem:[#allocation3] sm:$0x1] %vm294_vm4, %v293_v58 }
 0x1d4   :  { %354 = shalt.err (!%p351_p4)
}
 0x1d5   :  { %s355_s15 = scalar_lea.hbm %s487_s9, 16 }
 0x1d6   :  { %p356_p5 = scmp.ne.s32.totalorder %s487_s9, %s355_s15  ;;  %p359_p6 = scmp.lt.u32.totalorder %s355_s15, %s487_s9 }
 0x1d8   :  { %p361_p7 = pnand %p359_p6, %p356_p5 }
 0x1da   :  { %364 = shalt.err (!%p361_p7)
}
 0x1db   :  { %305 = dma.vmem_to_hbm [thread:$0]  %s303_s5, 16, %s487_s9, [#allocation4]  }
 0x1dc   :  { %365 = dma.done.wait [#allocation4], 16  }
 0x1dd   :  { %366 = vsyncadd [#allocation4], 4294967280 }
 0x1de   :  { %309 = vsyncpa [#allocation4], 1 }

</bundles_post_ra>
